<compile_context>
chip_gen: v6e
topology: v6e:2x2x1
jax: 0.10.0
libtpu: 0.0.40
codegen_flags: <defaults>
</compile_context>

<pallas_src>
import functools

import jax
import jax.numpy as jnp
from jax.experimental import pallas as pl
from jax.experimental.pallas import tpu as pltpu

_TM_MIN = 512  # lane tile (multiple of 128); 512+ amortizes per-grid-step overhead


def _round_up(x: int, m: int) -> int:
    return ((x + m - 1) // m) * m


def _wn_weight(v, g):
    # nn.utils.weight_norm (dim=0): w[o] = g[o] * v[o] / ||v[o]||
    vnorm = jnp.sqrt(jnp.sum(v * v, axis=tuple(range(1, v.ndim)), keepdims=True))
    return g.reshape((-1,) + (1,) * (v.ndim - 1)) * v / vnorm


# ---------------------------------------------------------------------------
# pltpu.roll shift-convention probe (one-time, cached).  The tap kernel shifts
# the concatenated activation window "left by off"; this tiny probe pins the
# rotate sign convention so the shift direction is correct either way.
# ---------------------------------------------------------------------------
_ROLL_PROBE = []


def _roll_like_jnp() -> bool:
    if not _ROLL_PROBE:
        def probe(x_ref, o_ref):
            o_ref[...] = pltpu.roll(x_ref[...], shift=3, axis=1)

        x = jnp.arange(8 * 128, dtype=jnp.float32).reshape(8, 128)
        y = pl.pallas_call(
            probe, out_shape=jax.ShapeDtypeStruct((8, 128), jnp.float32))(x)
        _ROLL_PROBE.append(bool(jnp.allclose(y, jnp.roll(x, 3, axis=1))))
    return _ROLL_PROBE[0]


# ---------------------------------------------------------------------------
# Pallas kernels
# ---------------------------------------------------------------------------
def _conv_tap_kernel(*refs, offs, relu, has_residual, roll_like_jnp):
    """KDxKHxKW conv as a sum of shifted per-tap matmuls; (Cout, TM) lane-dense out.

    refs = (w, b, x_cur, x_next[, residual], out)
      w      : (T, Cout, Cin) bf16  per-tap weight slabs (VMEM resident)
      b      : (Cout, 1)      f32
      x_cur  : (Cin, TM)      bf16  flattened padded activation, current block
      x_next : (Cin, TM)      bf16  next block (halo backing the tap shifts)
      res    : (Cout, TM)     f32   optional residual (already on padded grid)
      out    : (Cout, TM)     f32
    """
    if has_residual:
        w_ref, b_ref, x0_ref, x1_ref, r_ref, o_ref = refs
    else:
        w_ref, b_ref, x0_ref, x1_ref, o_ref = refs
        r_ref = None

    tm = o_ref.shape[-1]
    two_tm = 2 * tm
    # f32 for the lane rotations; matmul operands are cast back to bf16.
    xcat = jnp.concatenate([x0_ref[...], x1_ref[...]], axis=-1).astype(jnp.float32)

    acc = jnp.zeros(o_ref.shape, jnp.float32)
    for t, off in enumerate(offs):
        if off == 0:
            xt = xcat[:, :tm]
        else:
            shift = (two_tm - off) if roll_like_jnp else off
            xt = pltpu.roll(xcat, shift=shift, axis=1)[:, :tm]
        acc = acc + jnp.dot(w_ref[t], xt.astype(jnp.bfloat16),
                            preferred_element_type=jnp.float32)

    acc = acc + b_ref[...]
    if relu:
        acc = jnp.maximum(acc, 0.0)
    if has_residual:
        acc = acc + r_ref[...]
    o_ref[...] = acc


def _bottleneck_kernel(w1_ref, b1_ref, w2_ref, b2_ref, x_ref, o_ref):
    """Fused ExpConv3D(1x1x1)+ReLU -> DecConv3D(1x1x1); lane-dense output."""
    h = jnp.dot(w1_ref[...], x_ref[...], preferred_element_type=jnp.float32)
    h = jnp.maximum(h + b1_ref[...], 0.0)
    h2 = jnp.dot(w2_ref[...], h.astype(jnp.bfloat16),
                 preferred_element_type=jnp.float32)
    o_ref[...] = h2 + b2_ref[...]


# ---------------------------------------------------------------------------
# Conv wrappers (weight-norm + layout glue around the Pallas kernels)
# ---------------------------------------------------------------------------
def conv3d_spatial(x, v, g, b, *, pad, pad_mode, relu=False, residual=None):
    """Weight-normalized Conv3d (stride 1) + optional ReLU + optional residual.

    x: (N, Cin, D, H, W); v: (Cout, Cin, KD, KH, KW); g, b: (Cout,)
    The conv is evaluated on the padded grid with the spatial index flattened
    onto the lane axis; tap shifts happen in-VMEM (no HBM im2col), and the
    output is (Cout, M)-transposed so stores are full-width and unmasked.
    """
    N, Cin, D, H, W = x.shape
    Cout, _, KD, KH, KW = v.shape
    T = KD * KH * KW

    w = _wn_weight(v, g)                                       # (Cout, Cin, KD, KH, KW)
    w_taps = w.transpose(2, 3, 4, 0, 1).reshape(T, Cout, Cin).astype(jnp.bfloat16)
    bias = b.reshape(Cout, 1).astype(jnp.float32)

    pd, ph, pw = pad
    if pd or ph or pw:
        mode = "constant" if pad_mode == "zeros" else "reflect"
        xp = jnp.pad(x, ((0, 0), (0, 0), (pd, pd), (ph, ph), (pw, pw)), mode=mode)
    else:
        xp = x
    Dp, Hp, Wp = xp.shape[2], xp.shape[3], xp.shape[4]
    Do, Ho, Wo = Dp - (KD - 1), Hp - (KH - 1), Wp - (KW - 1)

    # Flat tap offsets on the padded grid (cross-correlation order, matches the
    # (KD, KH, KW, Cout, Cin) weight transpose above).
    offs = tuple(kd * Hp * Wp + kh * Wp + kw
                 for kd in range(KD) for kh in range(KH) for kw in range(KW))
    max_off = max(offs)

    tm = max(_TM_MIN, _round_up(max_off, 128))   # halo must fit inside one extra block
    P = N * Dp * Hp * Wp
    Pp = _round_up(P, tm)

    # Channel-major flattened padded activation, streamed as bf16.  One extra
    # zero block at the end backs the (i+1) halo stream of the last tile.
    xf = xp.transpose(1, 0, 2, 3, 4).reshape(Cin, P).astype(jnp.bfloat16)
    xf = jnp.pad(xf, ((0, 0), (0, Pp + tm - P)))

    args = [w_taps, bias, xf, xf]
    in_specs = [
        pl.BlockSpec((T, Cout, Cin), lambda i: (0, 0, 0)),
        pl.BlockSpec((Cout, 1), lambda i: (0, 0)),
        pl.BlockSpec((Cin, tm), lambda i: (0, i)),
        pl.BlockSpec((Cin, tm), lambda i: (0, i + 1)),
    ]
    has_res = residual is not None
    if has_res:
        # Residual lives on the output grid (== input grid for the 'same' conv);
        # park it on the padded grid so it tiles identically to the output.
        rD, rH, rW = residual.shape[2], residual.shape[3], residual.shape[4]
        rp = jnp.pad(residual.astype(jnp.float32),
                     ((0, 0), (0, 0), (0, Dp - rD), (0, Hp - rH), (0, Wp - rW)))
        rf = rp.transpose(1, 0, 2, 3, 4).reshape(Cout, P)
        rf = jnp.pad(rf, ((0, 0), (0, Pp - P)))
        args.append(rf)
        in_specs.append(pl.BlockSpec((Cout, tm), lambda i: (0, i)))

    kernel = functools.partial(
        _conv_tap_kernel, offs=offs, relu=relu, has_residual=has_res,
        roll_like_jnp=_roll_like_jnp())

    # TODO(synk): for much larger Cin/spatial sizes (v7x's 64 MiB VMEM) add a
    # tap/K grid axis ('arbitrary') with an f32 VMEM accumulator scratch instead
    # of the fully unrolled tap loop, and raise the row-block count for 2 TCs.
    out = pl.pallas_call(
        kernel,
        out_shape=jax.ShapeDtypeStruct((Cout, Pp), jnp.float32),
        grid=(Pp // tm,),
        in_specs=in_specs,
        out_specs=pl.BlockSpec((Cout, tm), lambda i: (0, i)),
        compiler_params=pltpu.CompilerParams(dimension_semantics=("parallel",)),
    )(*args)

    # Crop the padded-grid output back to the valid conv output and restore NCDHW.
    out = out[:, :P].reshape(Cout, N, Dp, Hp, Wp)[:, :, :Do, :Ho, :Wo]
    return out.transpose(1, 0, 2, 3, 4)


def res_bottleneck(x, exp_p, dec_p):
    """Fused ExpConv3D(1x1x1)+ReLU -> DecConv3D(1x1x1) as one pallas_call."""
    N, F, D, H, W = x.shape
    v1, g1, b1 = exp_p
    v2, g2, b2 = dec_p
    Fe, Fd = v1.shape[0], v2.shape[0]
    w1 = _wn_weight(v1, g1).reshape(Fe, F).astype(jnp.bfloat16)
    w2 = _wn_weight(v2, g2).reshape(Fd, Fe).astype(jnp.bfloat16)

    M = N * D * H * W
    Mp = _round_up(M, 128)
    if Mp > _TM_MIN:
        tm = _TM_MIN
        Mp = _round_up(M, tm)
    else:
        tm = Mp

    xf = x.transpose(1, 0, 2, 3, 4).reshape(F, M).astype(jnp.bfloat16)
    xf = jnp.pad(xf, ((0, 0), (0, Mp - M)))

    out = pl.pallas_call(
        _bottleneck_kernel,
        out_shape=jax.ShapeDtypeStruct((Fd, Mp), jnp.float32),
        grid=(Mp // tm,),
        in_specs=[
            pl.BlockSpec((Fe, F), lambda i: (0, 0)),
            pl.BlockSpec((Fe, 1), lambda i: (0, 0)),
            pl.BlockSpec((Fd, Fe), lambda i: (0, 0)),
            pl.BlockSpec((Fd, 1), lambda i: (0, 0)),
            pl.BlockSpec((F, tm), lambda i: (0, i)),
        ],
        out_specs=pl.BlockSpec((Fd, tm), lambda i: (0, i)),
        compiler_params=pltpu.CompilerParams(dimension_semantics=("parallel",)),
    )(w1, b1.reshape(Fe, 1).astype(jnp.float32),
      w2, b2.reshape(Fd, 1).astype(jnp.float32), xf)

    return out[:, :M].reshape(Fd, N, D, H, W).transpose(1, 0, 2, 3, 4)


# ----------------------------- model pieces ----------------------------------
def depth_to_space(x, bs):
    # Exact translation of the reference DepthToSpace (NCHW).
    N, C, H, W = x.shape
    x = x.reshape(N, bs, bs, C // (bs * bs), H, W)
    x = x.transpose(0, 3, 4, 1, 5, 2)
    return x.reshape(N, C // (bs * bs), H * bs, W * bs)


def _init_conv(key, cin, cout, k):
    kv, kg, kb = jax.random.split(key, 3)
    v = jax.random.normal(kv, (cout, cin) + tuple(k), jnp.float32) * 0.1
    g = jax.random.uniform(kg, (cout,), jnp.float32, minval=0.5, maxval=1.5)
    b = jax.random.normal(kb, (cout,), jnp.float32) * 0.05
    return v, g, b


def build_params(key, cin, num_filters, kernel_size, exp_rate, decay_rate,
                 num_res_blocks, up_scale, initial_depth):
    keys = iter(jax.random.split(key, 64))
    F = num_filters
    params = {}
    params["norm0"] = _init_conv(next(keys), cin, F, kernel_size)
    # The reference ResBlockConv3D instantiates fresh (randomly initialized)
    # convs inside forward every call; we mirror that with per-block params.
    params["res"] = []
    for _ in range(num_res_blocks):
        exp = _init_conv(next(keys), F, F * exp_rate, (1, 1, 1))
        dec = _init_conv(next(keys), F * exp_rate, int(F * decay_rate), (1, 1, 1))
        nrm = _init_conv(next(keys), int(F * decay_rate), F, kernel_size)
        params["res"].append({"exp": exp, "dec": dec, "norm": nrm})
    n_up = 1 + max(0, initial_depth // up_scale - 1)
    params["up_norm"] = [_init_conv(next(keys), F, F, kernel_size) for _ in range(n_up)]
    params["up_conv"] = _init_conv(next(keys), F, up_scale ** 2, kernel_size)
    return params


def conv3d_resnet_forward(x, params, *, kernel_size, num_res_blocks, up_scale,
                          input_last_dim):
    pad_same = tuple((k - 1) // 2 for k in kernel_size)  # samePaddingForConv3d, stride 1

    # NormConv3D + F.relu
    x = conv3d_spatial(x, *params["norm0"], pad=pad_same, pad_mode="zeros", relu=True)

    # ResBlockConv3D x numResBlocks: fused 1x1x1 pair, then 3x3x3 norm conv + skip.
    for i in range(num_res_blocks):
        p = params["res"][i]
        h = res_bottleneck(x, p["exp"], p["dec"])                  # ExpConv3D+ReLU -> DecConv3D
        x = conv3d_spatial(h, *p["norm"], pad=pad_same, pad_mode="zeros",
                           residual=x)                             # NormConv3D + skip

    # UpSampleConv3D: reflect-padded NormConv3Ds, then valid conv to scale^2 channels
    for p in params["up_norm"]:
        x = conv3d_spatial(x, *p, pad=pad_same, pad_mode="reflect")
    x = conv3d_spatial(x, *params["up_conv"], pad=(0, 0, 0), pad_mode="zeros")

    # Reshape((W0-2, W0-2, scale^2)) — literal torch .view
    side = input_last_dim - 2
    _reshaped = x.reshape(side, side, up_scale ** 2)
    # TODO(synk): the reference DepthToSpace requires 4-D NCHW and would raise on
    # the 3-D Reshape output; we apply its documented semantics to the upsample
    # output viewed as (N, scale^2, side, side), which is the evident intent.
    del _reshaped
    x4 = x.reshape(x.shape[0], up_scale ** 2, side, side)
    return depth_to_space(x4, up_scale)


# --------------------------------- main ---------------------------------------
if __name__ == "__main__":
    key = jax.random.PRNGKey(0)
    # Small shapes consistent with the module: depth=3 so the final valid
    # (3,3,3) conv collapses depth to 1 and the Reshape((W-2, W-2, 9)) is valid.
    N, Cin, D, H, W = 1, 4, 3, 9, 9
    kernel_size = (3, 3, 3)
    num_filters, exp_rate, decay_rate = 8, 2, 0.5
    num_res_blocks, up_scale = 2, 3

    kx, kp = jax.random.split(key)
    x = jax.random.normal(kx, (N, Cin, D, H, W), jnp.float32)
    params = build_params(kp, Cin, num_filters, kernel_size, exp_rate, decay_rate,
                          num_res_blocks, up_scale, initial_depth=W - 2)

    # Pin the pltpu.roll convention once (tiny probe kernel) before tracing.
    _roll_like_jnp()

    fwd = jax.jit(functools.partial(
        conv3d_resnet_forward,
        kernel_size=kernel_size,
        num_res_blocks=num_res_blocks,
        up_scale=up_scale,
        input_last_dim=W,
    ))
    out = fwd(x, params)
    jax.block_until_ready(out)
    assert out.shape == (1, 1, (W - 2) * up_scale, (W - 2) * up_scale), out.shape
    assert jnp.all(jnp.isfinite(out))
    print("KERNEL_OK")
</pallas_src>

<mosaic_0001>
module attributes {stable_mosaic.version = 11 : i64} {
  func.func @probe(%arg0: memref<8x128xf32, #tpu.memory_space<vmem>>, %arg1: memref<8x128xf32, #tpu.memory_space<vmem>>) attributes {dimension_semantics = [], scalar_prefetch = 0 : i64, scratch_operands = 0 : i64, tpu.core_type = #tpu.core_type<tc>} {
    %c0 = arith.constant 0 : index
    %c0_0 = arith.constant 0 : index
    %0 = vector.load %arg0[%c0, %c0_0] : memref<8x128xf32, #tpu.memory_space<vmem>>, vector<8x128xf32>
    %c3_i32 = arith.constant 3 : i32
    %1 = tpu.dynamic_rotate %0 by %c3_i32 dim 1 : vector<8x128xf32>, i32 -> vector<8x128xf32>
    %c0_1 = arith.constant 0 : index
    %c0_2 = arith.constant 0 : index
    %2 = vector.load %arg1[%c0_1, %c0_2] : memref<8x128xf32, #tpu.memory_space<vmem>>, vector<8x128xf32>
    tpu.vector_store %arg1[%c0_1, %c0_2], %1 {strides = array<i32>} : memref<8x128xf32, #tpu.memory_space<vmem>>, vector<8x128xf32>,
    return
  }
}

</mosaic_0001>

<bundles_post_ra>
// kernel: tpu_custom_call.1
= control target key start
LH: loop header
LB: loop body
LE: loop exit
PB: predicated region body
PF: predicated region fallthrough
CT: control target
= control target key end

     0   :  { %6 = vsyncpa [#allocation3], 0  ;;  %s106_s0 = inlined_call_operand.hbm [shape: f32[8,128], index: 0, kind: input, shape index: {}]   ;;  %s107_s1 = inlined_call_operand.hbm [shape: f32[8,128], index: 1, kind: output, shape index: {}]  }
   0x1   :  { %7 = vsyncpa [#allocation4], 0  ;;  %s87_s6 = smov [#allocation2]  }
   0x2   :  { %s14_s7 = sshll.u32 %s87_s6, 4  ;;  %s15_s7 = int_to_ptr.vmem [resolvable:$true] %s14_s7 }
   0x3   :  { %s51_s8 = scalar_lea.vmem %s15_s7, 128  ;;  %p56_p1 = scmp.lt.s32.totalorder %s15_s7, %s15_s7 }
   0x4   :  { %p52_p0 = scmp.ne.s32.totalorder %s15_s7, %s51_s8  ;;  %p57_p2 = scmp.lt.s32.totalorder %s51_s8, %s51_s8 }
   0x6   :  { %p58_p3 = por %p57_p2, %p56_p1 }
   0x8   :  { %p59_p4 = pnand %p58_p3, %p52_p0 }
   0xa   :  { %62 = shalt.err (!%p59_p4)
}
   0xb   :  { %17 = dma.hbm_to_vmem [thread:$0]  %s106_s0, 128, %s15_s7, [#allocation3]  }
   0xc   :  { %83 = dma.done.wait [#allocation3], 128  }
   0xd   :  { %84 = vsyncadd [#allocation3], 4294967168  ;;  %v21_v0 = vld [vmem:[#allocation2] sm:$0xff]  ;;  %s88_s11 = smov 3   ;;  %s89_s12 = smov [#allocation5]  }
   0xe   :  { %22 = vrot.lane.b32.xlu0 %v21_v0, %s88_s11  ;;  %s31_s13 = sshll.u32 %s89_s12, 4  ;;  %s32_s13 = int_to_ptr.vmem [resolvable:$true] %s31_s13 }
   0xf   :  { %s63_s14 = scalar_lea.vmem %s32_s13, 128  ;;  %p68_p6 = scmp.lt.s32.totalorder %s32_s13, %s32_s13 }
  0x10   :  { %p64_p5 = scmp.ne.s32.totalorder %s32_s13, %s63_s14  ;;  %p69_p7 = scmp.lt.s32.totalorder %s63_s14, %s63_s14 }
  0x12   :  { %p70_p8 = por %p69_p7, %p68_p6 }
  0x14   :  { %p71_p9 = pnand %p70_p8, %p64_p5 }
  0x80   :  { %v23_v1 = vpop.permute.xlu0 %22 }
  0x81   :  { %24 = vst [vmem:[#allocation5] sm:$0xff] %v23_v1 }
  0x82   :  { %74 = shalt.err (!%p71_p9)
}
  0x83   :  { %34 = dma.vmem_to_hbm [thread:$0]  %s32_s13, 128, %s107_s1, [#allocation4]  }
  0x84   :  { %85 = dma.done.wait [#allocation4], 128  }
  0x85   :  { %86 = vsyncadd [#allocation4], 4294967168 }
  0x86   :  { %38 = vsyncpa [#allocation3], 1 }
  0x87   :  { %39 = vsyncpa [#allocation4], 1 }

</bundles_post_ra>
